<compile_context>
chip_gen: v6e
topology: v6e:2x2x1
jax: 0.10.0
libtpu: 0.0.40
codegen_flags: <defaults>
</compile_context>

<pallas_src>
import functools

import jax
import jax.numpy as jnp
from jax.experimental import pallas as pl
from jax.experimental.pallas import tpu as pltpu

LANE = 128
SUBLANE = 8
MIN_ROWS = 32                      # below this (n < 4096) plain jnp is cheaper
VMEM_LIMIT_BYTES = 48 * 1024 * 1024  # < physical on v5e/v6e/v7x, >> our needs


def _cdiv(a, b):
    return -(-a // b)


def _device_tuning():
    """(requested TensorCore splits, tile-row cap) for the local TPU."""
    try:
        kind = jax.devices()[0].device_kind.lower()
    except Exception:
        kind = ""
    if "7" in kind:        # v7x: 2 TCs/chip, 3.2 TB/s -> bigger tiles + split
        return 2, 8192     # 8192 x 128 x f32 = 4 MiB per block
    return 1, 4096         # v5e/v6e: single TC, 2 MiB blocks ~ roofline knee


def _dice_partial_kernel(logits_ref, truth_ref, out_ref, *,
                         rows_valid, tile_rows, inner, mask_rows):
    """Accumulate lane-parallel partial sums of (tanh(.5x)*t, tanh(.5x), t).

    out_ref: (1, 3, 8, 128) f32 block whose index depends only on the outer
    ("parallel") grid axis, so it stays resident across the inner "arbitrary"
    axis -- the standard accumulator pattern.
    """
    c = pl.program_id(0)
    i = pl.program_id(1)

    @pl.when(i == 0)
    def _init():
        out_ref[...] = jnp.zeros_like(out_ref)

    # Cast under the DMA: inputs stream at their native width.
    x = logits_ref[...].astype(jnp.float32)
    # sigmoid(x) = 0.5*tanh(0.5*x) + 0.5; only tanh(0.5*x) is accumulated here
    # (one EUP push + one VPU mul per element), the affine is undone in the
    # wrapper from the element count.
    th = jnp.tanh(0.5 * x)
    t = truth_ref[...].astype(jnp.float32)

    def accumulate(th_v, t_v):
        # (tile_rows,128) -> (tile_rows//8, 8, 128): vreg-aligned reshape; the
        # axis-0 sums are pure VPU adds (no XLU / scalar work in steady state;
        # the cross-lane reduce happens once, in the wrapper).
        th3 = th_v.reshape(tile_rows // SUBLANE, SUBLANE, LANE)
        t3 = t_v.reshape(tile_rows // SUBLANE, SUBLANE, LANE)
        out_ref[0, 0, :, :] = out_ref[0, 0, :, :] + jnp.sum(th3 * t3, axis=0)
        out_ref[0, 1, :, :] = out_ref[0, 1, :, :] + jnp.sum(th3, axis=0)
        out_ref[0, 2, :, :] = out_ref[0, 2, :, :] + jnp.sum(t3, axis=0)

    if mask_rows:
        block_id = c * inner + i
        boundary = rows_valid // tile_rows      # static Python int

        @pl.when(block_id < boundary)
        def _full_block():                      # bulk of the grid: no mask ops
            accumulate(th, t)

        @pl.when(block_id >= boundary)
        def _tail_block():
            # Row-granular mask (no per-element index -> no int32 overflow).
            # select (not multiply) so unspecified OOB data can never inject
            # NaN/Inf into the sums.
            r = jax.lax.broadcasted_iota(jnp.int32, (tile_rows, LANE), 0)
            valid = (block_id * tile_rows + r) < rows_valid
            accumulate(jnp.where(valid, th, 0.0), jnp.where(valid, t, 0.0))
    else:
        accumulate(th, t)


def dice_loss_with_logits(logits, truth, smooth=0.1):
    """Exact equivalent of DiceLossWithLogits.forward for arbitrary shapes."""
    n = logits.size
    # torch does truth.float(); keep the HBM stream narrow instead and cast
    # to f32 inside the kernel.  bool -> int8 (1B) only; ints/floats as-is.
    if truth.dtype == jnp.bool_:
        truth = truth.astype(jnp.int8)

    flat_l = logits.reshape(-1)
    flat_t = truth.reshape(-1)

    rows = n // LANE
    if rows < MIN_ROWS:                       # tiny input: plain jnp is cheaper
        return _dice_jnp(flat_l, flat_t, smooth)

    n_main = rows * LANE
    tail = n - n_main
    if tail:
        # Ragged lane tail (<128 elements): reduce it with plain jnp.  Only in
        # this (rare) case does the main-part slice cost a copy pass.
        main_l = jax.lax.slice(flat_l, (0,), (n_main,))
        main_t = jax.lax.slice(flat_t, (0,), (n_main,))
        tail_l = jax.lax.slice(flat_l, (n_main,), (n,)).astype(jnp.float32)
        tail_t = jax.lax.slice(flat_t, (n_main,), (n,)).astype(jnp.float32)
        p_tail = jax.nn.sigmoid(tail_l)
        tail_inter = jnp.sum(p_tail * tail_t)
        tail_psum = jnp.sum(p_tail)
        tail_tsum = jnp.sum(tail_t)
    else:
        main_l, main_t = flat_l, flat_t       # zero-copy path
        tail_inter = tail_psum = tail_tsum = 0.0

    l2 = main_l.reshape(rows, LANE)           # free (row-major) reshapes
    t2 = main_t.reshape(rows, LANE)

    splits_req, tile_cap = _device_tuning()
    tile_rows = min(tile_cap, (rows // 32) * 32)      # mult of 32: ok for i8/f16/bf16/f32
    total_blocks = _cdiv(rows, tile_rows)             # only last block overhangs
    num_splits = max(1, min(splits_req, total_blocks))
    inner = _cdiv(total_blocks, num_splits)
    last_block = total_blocks - 1
    # Mask whenever the last block overhangs OR the split adds clamped extra steps.
    mask_rows = (rows % tile_rows != 0) or (num_splits * inner > total_blocks)

    def in_index(c, i):
        # Clamp so no grid step ever maps to a fully out-of-bounds block; the
        # kernel masks extra steps to zero via the (unclamped) block id.
        return (jnp.minimum(c * inner + i, last_block), 0)

    in_spec = pl.BlockSpec((tile_rows, LANE), in_index)
    out_spec = pl.BlockSpec((1, 3, SUBLANE, LANE), lambda c, i: (c, 0, 0, 0))

    kernel = functools.partial(
        _dice_partial_kernel,
        rows_valid=rows, tile_rows=tile_rows, inner=inner, mask_rows=mask_rows,
    )

    bytes_accessed = int(
        n_main * (l2.dtype.itemsize + t2.dtype.itemsize)
        + num_splits * 3 * SUBLANE * LANE * 4)

    partials = pl.pallas_call(
        kernel,
        out_shape=jax.ShapeDtypeStruct((num_splits, 3, SUBLANE, LANE), jnp.float32),
        grid_spec=pltpu.PrefetchScalarGridSpec(
            num_scalar_prefetch=0,
            grid=(num_splits, inner),
            in_specs=[in_spec, in_spec],
            out_specs=out_spec,
        ),
        compiler_params=pltpu.CompilerParams(
            dimension_semantics=("parallel", "arbitrary"),
            vmem_limit_bytes=VMEM_LIMIT_BYTES,
        ),
        cost_estimate=pl.CostEstimate(
            flops=6 * n_main, transcendentals=n_main,
            bytes_accessed=bytes_accessed),
    )(l2, t2)

    # Tiny follow-up cross-lane reduce (num_splits*3*1024 floats) + dice math.
    sums = jnp.sum(partials, axis=(0, 2, 3))
    s_tht, s_th, s_t = sums[0], sums[1], sums[2]
    # Undo the hoisted sigmoid affine: p = 0.5*tanh(0.5*x) + 0.5.
    inter_main = 0.5 * s_tht + 0.5 * s_t
    psum_main = 0.5 * s_th + 0.5 * float(n_main)

    intersection = inter_main + tail_inter
    p_sum = psum_main + tail_psum
    t_sum = s_t + tail_tsum
    union = p_sum + t_sum + smooth
    return 1.0 - (2.0 * intersection + smooth) / union


def _dice_jnp(flat_l, flat_t, smooth):
    p = jax.nn.sigmoid(flat_l.astype(jnp.float32))
    t = flat_t.astype(jnp.float32)
    inter = jnp.sum(p * t)
    union = jnp.sum(p) + jnp.sum(t) + smooth
    return 1.0 - (2.0 * inter + smooth) / union


def _reference(logits, truth, smooth=0.1):
    probs = jax.nn.sigmoid(logits.astype(jnp.float32)).reshape(-1)
    tflat = truth.astype(jnp.float32).reshape(-1)
    intersection = jnp.sum(probs * tflat)
    union = jnp.sum(probs) + jnp.sum(tflat) + smooth
    return 1.0 - (2.0 * intersection + smooth) / union


if __name__ == "__main__":
    key = jax.random.PRNGKey(0)
    k1, k2, k3, k4, k5, k6 = jax.random.split(key, 6)

    # NCHW conv-style inputs; n = 8192 (multiple of 128 -> zero-copy path).
    logits = jax.random.normal(k1, (2, 4, 32, 32), dtype=jnp.float32)
    truth = (jax.random.uniform(k2, (2, 4, 32, 32)) > 0.5).astype(jnp.float32)
    loss = jax.block_until_ready(dice_loss_with_logits(logits, truth, smooth=0.1))
    ref = _reference(logits, truth, smooth=0.1)
    # Tolerance accounts for EUP tanh-based sigmoid vs XLA's logistic.
    assert jnp.allclose(loss, ref, atol=1e-4, rtol=1e-4), (loss, ref)

    # Ragged element count (n = 4845): masked last block + <128-elem lane tail.
    logits2 = jax.random.normal(k3, (3, 5, 17, 19), dtype=jnp.float32)
    truth2 = (jax.random.uniform(k4, (3, 5, 17, 19)) > 0.5).astype(jnp.float32)
    loss2 = jax.block_until_ready(dice_loss_with_logits(logits2, truth2, smooth=0.1))
    ref2 = _reference(logits2, truth2, smooth=0.1)
    assert jnp.allclose(loss2, ref2, atol=1e-4, rtol=1e-4), (loss2, ref2)

    # Bool truth streams natively as int8 (no wrapper float32 cast pass).
    logits3 = jax.random.normal(k5, (2, 3, 40, 40), dtype=jnp.float32)
    truth3 = jax.random.uniform(k6, (2, 3, 40, 40)) > 0.5
    loss3 = jax.block_until_ready(dice_loss_with_logits(logits3, truth3, smooth=0.1))
    ref3 = _reference(logits3, truth3, smooth=0.1)
    assert jnp.allclose(loss3, ref3, atol=1e-4, rtol=1e-4), (loss3, ref3)

    print("KERNEL_OK")
</pallas_src>

<mosaic_0001>
module attributes {stable_mosaic.version = 11 : i64} {
  func.func @_dice_partial_kernel(%arg0: i32, %arg1: i32, %arg2: memref<64x128xf32, #tpu.memory_space<vmem>>, %arg3: memref<64x128xf32, #tpu.memory_space<vmem>>, %arg4: memref<1x3x8x128xf32, #tpu.memory_space<vmem>>) attributes {dimension_semantics = [#tpu.dimension_semantics<parallel>, #tpu.dimension_semantics<arbitrary>], iteration_bounds = array<i64: 1, 1>, scalar_prefetch = 0 : i64, scratch_operands = 0 : i64, tpu.core_type = #tpu.core_type<tc>, window_params = [{transform_indices = @transform_0, window_bounds = array<i64: 64, 128>}, {transform_indices = @transform_1, window_bounds = array<i64: 64, 128>}, {transform_indices = @transform_2, window_bounds = array<i64: 1, 3, 8, 128>}]} {
    %c0_i32 = arith.constant 0 : i32
    %0 = arith.cmpi eq, %arg1, %c0_i32 : i32
    %1 = arith.extui %0 : i1 to i32
    %c0_i32_0 = arith.constant 0 : i32
    %2 = arith.cmpi ne, %1, %c0_i32_0 : i32
    scf.if %2 {
      %cst_29 = arith.constant 0.000000e+00 : f32
      %32 = vector.broadcast %cst_29 : f32 to vector<1x3x8x128xf32>
      %c0_30 = arith.constant 0 : index
      %c0_31 = arith.constant 0 : index
      %c0_32 = arith.constant 0 : index
      %c0_33 = arith.constant 0 : index
      %33 = vector.load %arg4[%c0_30, %c0_31, %c0_32, %c0_33] : memref<1x3x8x128xf32, #tpu.memory_space<vmem>>, vector<1x3x8x128xf32>
      tpu.vector_store %arg4[%c0_30, %c0_31, %c0_32, %c0_33], %32 {strides = array<i32>} : memref<1x3x8x128xf32, #tpu.memory_space<vmem>>, vector<1x3x8x128xf32>,
    } else {
    }
    %c0 = arith.constant 0 : index
    %c0_1 = arith.constant 0 : index
    %3 = vector.load %arg2[%c0, %c0_1] : memref<64x128xf32, #tpu.memory_space<vmem>>, vector<64x128xf32>
    %cst = arith.constant 5.000000e-01 : f32
    %4 = vector.broadcast %cst : f32 to vector<64x128xf32>
    %5 = arith.mulf %4, %3 : vector<64x128xf32>
    %6 = math.tanh %5 : vector<64x128xf32>
    %c0_2 = arith.constant 0 : index
    %c0_3 = arith.constant 0 : index
    %7 = vector.load %arg3[%c0_2, %c0_3] : memref<64x128xf32, #tpu.memory_space<vmem>>, vector<64x128xf32>
    %8 = vector.shape_cast %6 : vector<64x128xf32> to vector<8x8x128xf32>
    %9 = vector.shape_cast %7 : vector<64x128xf32> to vector<8x8x128xf32>
    %c0_4 = arith.constant 0 : index
    %c0_5 = arith.constant 0 : index
    %c0_6 = arith.constant 0 : index
    %c0_7 = arith.constant 0 : index
    %10 = vector.load %arg4[%c0_4, %c0_5, %c0_6, %c0_7] : memref<1x3x8x128xf32, #tpu.memory_space<vmem>>, vector<1x1x8x128xf32>
    %11 = vector.shape_cast %10 : vector<1x1x8x128xf32> to vector<8x128xf32>
    %12 = arith.mulf %8, %9 : vector<8x8x128xf32>
    %cst_8 = arith.constant dense<0.000000e+00> : vector<8x128xf32>
    %13 = vector.multi_reduction <add>, %12, %cst_8 [0] : vector<8x8x128xf32> to vector<8x128xf32>
    %14 = arith.addf %11, %13 : vector<8x128xf32>
    %c0_9 = arith.constant 0 : index
    %c0_10 = arith.constant 0 : index
    %c0_11 = arith.constant 0 : index
    %c0_12 = arith.constant 0 : index
    %15 = vector.load %arg4[%c0_9, %c0_10, %c0_11, %c0_12] : memref<1x3x8x128xf32, #tpu.memory_space<vmem>>, vector<1x1x8x128xf32>
    %16 = vector.shape_cast %15 : vector<1x1x8x128xf32> to vector<8x128xf32>
    %17 = vector.shape_cast %14 : vector<8x128xf32> to vector<1x1x8x128xf32>
    tpu.vector_store %arg4[%c0_9, %c0_10, %c0_11, %c0_12], %17 {strides = array<i32>} : memref<1x3x8x128xf32, #tpu.memory_space<vmem>>, vector<1x1x8x128xf32>,
    %c0_13 = arith.constant 0 : index
    %c1 = arith.constant 1 : index
    %c0_14 = arith.constant 0 : index
    %c0_15 = arith.constant 0 : index
    %18 = vector.load %arg4[%c0_13, %c1, %c0_14, %c0_15] : memref<1x3x8x128xf32, #tpu.memory_space<vmem>>, vector<1x1x8x128xf32>
    %19 = vector.shape_cast %18 : vector<1x1x8x128xf32> to vector<8x128xf32>
    %cst_16 = arith.constant dense<0.000000e+00> : vector<8x128xf32>
    %20 = vector.multi_reduction <add>, %8, %cst_16 [0] : vector<8x8x128xf32> to vector<8x128xf32>
    %21 = arith.addf %19, %20 : vector<8x128xf32>
    %c0_17 = arith.constant 0 : index
    %c1_18 = arith.constant 1 : index
    %c0_19 = arith.constant 0 : index
    %c0_20 = arith.constant 0 : index
    %22 = vector.load %arg4[%c0_17, %c1_18, %c0_19, %c0_20] : memref<1x3x8x128xf32, #tpu.memory_space<vmem>>, vector<1x1x8x128xf32>
    %23 = vector.shape_cast %22 : vector<1x1x8x128xf32> to vector<8x128xf32>
    %24 = vector.shape_cast %21 : vector<8x128xf32> to vector<1x1x8x128xf32>
    tpu.vector_store %arg4[%c0_17, %c1_18, %c0_19, %c0_20], %24 {strides = array<i32>} : memref<1x3x8x128xf32, #tpu.memory_space<vmem>>, vector<1x1x8x128xf32>,
    %c0_21 = arith.constant 0 : index
    %c2 = arith.constant 2 : index
    %c0_22 = arith.constant 0 : index
    %c0_23 = arith.constant 0 : index
    %25 = vector.load %arg4[%c0_21, %c2, %c0_22, %c0_23] : memref<1x3x8x128xf32, #tpu.memory_space<vmem>>, vector<1x1x8x128xf32>
    %26 = vector.shape_cast %25 : vector<1x1x8x128xf32> to vector<8x128xf32>
    %cst_24 = arith.constant dense<0.000000e+00> : vector<8x128xf32>
    %27 = vector.multi_reduction <add>, %9, %cst_24 [0] : vector<8x8x128xf32> to vector<8x128xf32>
    %28 = arith.addf %26, %27 : vector<8x128xf32>
    %c0_25 = arith.constant 0 : index
    %c2_26 = arith.constant 2 : index
    %c0_27 = arith.constant 0 : index
    %c0_28 = arith.constant 0 : index
    %29 = vector.load %arg4[%c0_25, %c2_26, %c0_27, %c0_28] : memref<1x3x8x128xf32, #tpu.memory_space<vmem>>, vector<1x1x8x128xf32>
    %30 = vector.shape_cast %29 : vector<1x1x8x128xf32> to vector<8x128xf32>
    %31 = vector.shape_cast %28 : vector<8x128xf32> to vector<1x1x8x128xf32>
    tpu.vector_store %arg4[%c0_25, %c2_26, %c0_27, %c0_28], %31 {strides = array<i32>} : memref<1x3x8x128xf32, #tpu.memory_space<vmem>>, vector<1x1x8x128xf32>,
    return
  }
  func.func @transform_0(%arg0: i32, %arg1: i32) -> (i32, i32) {
    %c1_i32 = arith.constant 1 : i32
    %0 = arith.muli %arg0, %c1_i32 : i32
    %1 = arith.addi %0, %arg1 : i32
    %c0_i32 = arith.constant 0 : i32
    %2 = arith.minsi %1, %c0_i32 : i32
    %c0_i32_0 = arith.constant 0 : i32
    %c0_i32_1 = arith.constant 0 : i32
    return %2, %c0_i32_0 : i32, i32
  }
  func.func @transform_1(%arg0: i32, %arg1: i32) -> (i32, i32) {
    %c1_i32 = arith.constant 1 : i32
    %0 = arith.muli %arg0, %c1_i32 : i32
    %1 = arith.addi %0, %arg1 : i32
    %c0_i32 = arith.constant 0 : i32
    %2 = arith.minsi %1, %c0_i32 : i32
    %c0_i32_0 = arith.constant 0 : i32
    %c0_i32_1 = arith.constant 0 : i32
    return %2, %c0_i32_0 : i32, i32
  }
  func.func @transform_2(%arg0: i32, %arg1: i32) -> (i32, i32, i32, i32) {
    %c0_i32 = arith.constant 0 : i32
    %c0_i32_0 = arith.constant 0 : i32
    %c0_i32_1 = arith.constant 0 : i32
    %c0_i32_2 = arith.constant 0 : i32
    return %arg0, %c0_i32, %c0_i32_0, %c0_i32_1 : i32, i32, i32, i32
  }
}

</mosaic_0001>

<bundles_post_ra>
// kernel: tpu_custom_call.1
= control target key start
LH: loop header
LB: loop body
LE: loop exit
PB: predicated region body
PF: predicated region fallthrough
CT: control target
= control target key end

     0   :  { %7 = vsyncpa [#allocation3], 0  ;;  %s287_s0 = inlined_call_operand.hbm [shape: f32[64,128], index: 0, kind: input, shape index: {}]   ;;  %s288_s1 = inlined_call_operand.hbm [shape: f32[64,128], index: 1, kind: input, shape index: {}]   ;;  %s289_s2 = inlined_call_operand.hbm [shape: f32[1,3,8,128], index: 2, kind: output, shape index: {}]  }
   0x1   :  { %8 = vsyncpa [#allocation6], 0 }
   0x2   :  { %9 = vsyncpa [#allocation4], 0  ;;  %s249_s9 = smov [#allocation2]  }
   0x3   :  { %s21_s10 = sshll.u32 %s249_s9, 4  ;;  %s22_s10 = int_to_ptr.vmem [resolvable:$true] %s21_s10 }
   0x4   :  { %s191_s11 = scalar_lea.vmem %s22_s10, 1024  ;;  %p196_p1 = scmp.lt.s32.totalorder %s22_s10, %s22_s10 }
   0x5   :  { %p192_p0 = scmp.ne.s32.totalorder %s22_s10, %s191_s11  ;;  %p197_p2 = scmp.lt.s32.totalorder %s191_s11, %s191_s11 }
   0x7   :  { %p198_p3 = por %p197_p2, %p196_p1 }
   0x9   :  { %p199_p4 = pnand %p198_p3, %p192_p0 }
   0xb   :  { %202 = shalt.err (!%p199_p4)
}
   0xc   :  { %s250_s12 = smov 128   ;;  %s251_s13 = smov 8  }
   0xd   :  { %27 = dma.hbm_to_vmem [thread:$0]  %s287_s0, 1024, %s22_s10, [#allocation3], %s250_s12, %s250_s12, %s251_s13  }
   0xe   :  { %s252_s16 = smov [#allocation5]  }
   0xf   :  { %s39_s17 = sshll.u32 %s252_s16, 4  ;;  %s40_s17 = int_to_ptr.vmem [resolvable:$true] %s39_s17 }
  0x10   :  { %s211_s18 = scalar_lea.vmem %s40_s17, 1024  ;;  %p216_p6 = scmp.lt.s32.totalorder %s40_s17, %s40_s17 }
  0x11   :  { %p212_p5 = scmp.ne.s32.totalorder %s40_s17, %s211_s18  ;;  %p217_p7 = scmp.lt.s32.totalorder %s211_s18, %s211_s18 }
  0x13   :  { %p218_p8 = por %p217_p7, %p216_p6 }
  0x15   :  { %p219_p9 = pnand %p218_p8, %p212_p5 }
  0x17   :  { %222 = shalt.err (!%p219_p9)
}
  0x18   :  { %45 = dma.hbm_to_vmem [thread:$0]  %s288_s1, 1024, %s40_s17, [#allocation6], %s250_s12, %s250_s12, %s251_s13  }
  0x19   :  { %243 = dma.done.wait [#allocation3], 1024  }
  0x1a   :  { %244 = vsyncadd [#allocation3], 4294966272 }
  0x1b   :  { %245 = dma.done.wait [#allocation6], 1024  }
  0x1c   :  { %246 = vsyncadd [#allocation6], 4294966272  ;;  %v67_v0 = vld [vmem:[#allocation2] sm:$0xff]  ;;  %v68_v1 = vld [vmem:[#allocation2 + $0x8] sm:$0xff]  ;;  %s253_s0 = smov [#allocation7]  }
  0x1d   :  { %v69_v2 = vld [vmem:[#allocation2 + $0x10] sm:$0xff]  ;;  %v70_v3 = vld [vmem:[#allocation2 + $0x18] sm:$0xff]  ;;  %v71_v4 = vld [vmem:[#allocation2 + $0x20] sm:$0xff]  ;;  %v75_v6 = vmul.f32 0.5, %v67_v0  ;;  %v76_v7 = vmul.f32 0.5, %v68_v1  ;;  %s144_s1 = sshll.u32 %s253_s0, 4  ;;  %s145_s1 = int_to_ptr.vmem [resolvable:$true] %s144_s1 }
  0x1e   :  { %v72_v5 = vld [vmem:[#allocation2 + $0x28] sm:$0xff]  ;;  %v77_v8 = vmul.f32 0.5, %v69_v2  ;;  %v78_v9 = vmul.f32 0.5, %v70_v3  ;;  %v73_v10 = vld [vmem:[#allocation2 + $0x30] sm:$0xff]  ;;  %v79_v11 = vmul.f32 0.5, %v71_v4  ;;  %v91_v12 = vld [vmem:[#allocation5] sm:$0xff]  ;;  %p228_p11 = scmp.lt.s32.totalorder %s145_s1, %s145_s1 }
  0x1f   :  { %167 = vtanh.f32 %v75_v6  ;;  %v92_v13 = vld [vmem:[#allocation5 + $0x8] sm:$0xff]  ;;  %v80_v14 = vmul.f32 0.5, %v72_v5  ;;  %v74_v16 = vld [vmem:[#allocation2 + $0x38] sm:$0xff]  ;;  %v93_v17 = vld [vmem:[#allocation5 + $0x10] sm:$0xff]  ;;  %v81_v18 = vmul.f32 0.5, %v73_v10  ;;  %s223_s21 = scalar_lea.vmem %s145_s1, 384 }
  0x20   :  { %169 = vtanh.f32 %v76_v7  ;;  %v130_v15 = vadd.f32 %v92_v13, %v91_v12  ;;  %v94_v20 = vld [vmem:[#allocation5 + $0x18] sm:$0xff]  ;;  %v82_v21 = vmul.f32 0.5, %v74_v16  ;;  %v95_v23 = vld [vmem:[#allocation5 + $0x20] sm:$0xff]  ;;  %v96_v25 = vld [vmem:[#allocation5 + $0x28] sm:$0xff]  ;;  %p224_p10 = scmp.ne.s32.totalorder %s145_s1, %s223_s21  ;;  %p229_p12 = scmp.lt.s32.totalorder %s223_s21, %s223_s21 }
  0x21   :  { %171 = vtanh.f32 %v77_v8  ;;  %v97_v27 = vld [vmem:[#allocation5 + $0x30] sm:$0xff]  ;;  %v98_v29 = vld [vmem:[#allocation5 + $0x38] sm:$0xff] }
  0x22   :  { %173 = vtanh.f32 %v78_v9  ;;  %v131_v19 = vadd.f32 %v130_v15, %v93_v17  ;;  %p230_p13 = por %p229_p12, %p228_p11 }
  0x23   :  { %175 = vtanh.f32 %v79_v11 }
  0x24   :  { %177 = vtanh.f32 %v80_v14  ;;  %v132_v22 = vadd.f32 %v131_v19, %v94_v20  ;;  %p231_p0 = pnand %p230_p13, %p224_p10 }
  0x25   :  { %179 = vtanh.f32 %v81_v18 }
  0x26   :  { %v133_v24 = vadd.f32 %v132_v22, %v95_v23  ;;  %181 = vtanh.f32 %v82_v21 }
  0x28   :  { %v134_v26 = vadd.f32 %v133_v24, %v96_v25 }
  0x2a   :  { %v135_v28 = vadd.f32 %v134_v26, %v97_v27 }
  0x2c   :  { %v168_v30 = vpop.eup %167  ;;  %v136_v31 = vadd.f32 %v135_v28, %v98_v29 }
  0x2d   :  { %v170_v32 = vpop.eup %169  ;;  %v100_v33 = vmul.f32 %v168_v30, %v91_v12 }
  0x2e   :  { %v172_v34 = vpop.eup %171  ;;  %v101_v35 = vmul.f32 %v170_v32, %v92_v13  ;;  %v119_v36 = vadd.f32 %v170_v32, %v168_v30  ;;  %138 = vst [vmem:[#allocation7 + $0x10] sm:$0xff] %v136_v31 }
  0x2f   :  { %v174_v37 = vpop.eup %173  ;;  %v102_v38 = vmul.f32 %v172_v34, %v93_v17 }
  0x30   :  { %v176_v39 = vpop.eup %175  ;;  %v103_v40 = vmul.f32 %v174_v37, %v94_v20  ;;  %v108_v41 = vadd.f32 %v101_v35, %v100_v33  ;;  %v120_v42 = vadd.f32 %v172_v34, %v119_v36 }
  0x31   :  { %v178_v43 = vpop.eup %177  ;;  %v104_v44 = vmul.f32 %v176_v39, %v95_v23 }
  0x32   :  { %v109_v45 = vadd.f32 %v108_v41, %v102_v38  ;;  %v121_v46 = vadd.f32 %v174_v37, %v120_v42  ;;  %v180_v47 = vpop.eup %179  ;;  %v105_v48 = vmul.f32 %v178_v43, %v96_v25 }
  0x33   :  { %v182_v51 = vpop.eup %181  ;;  %v106_v52 = vmul.f32 %v180_v47, %v97_v27 }
  0x34   :  { %v110_v49 = vadd.f32 %v109_v45, %v103_v40  ;;  %v122_v50 = vadd.f32 %v176_v39, %v121_v46  ;;  %v107_v55 = vmul.f32 %v182_v51, %v98_v29 }
  0x36   :  { %v111_v53 = vadd.f32 %v110_v49, %v104_v44  ;;  %v123_v54 = vadd.f32 %v178_v43, %v122_v50 }
  0x38   :  { %v112_v56 = vadd.f32 %v111_v53, %v105_v48  ;;  %v124_v57 = vadd.f32 %v180_v47, %v123_v54 }
  0x3a   :  { %v113_v58 = vadd.f32 %v112_v56, %v106_v52  ;;  %v125_v59 = vadd.f32 %v182_v51, %v124_v57 }
  0x3c   :  { %v114_v60 = vadd.f32 %v113_v58, %v107_v55  ;;  %127 = vst [vmem:[#allocation7 + $0x8] sm:$0xff] %v125_v59 }
  0x3e   :  { %116 = vst [vmem:[#allocation7] sm:$0xff] %v114_v60 }
  0x3f   :  { %234 = shalt.err (!%p231_p0)
}
  0x40   :  { %150 = dma.vmem_to_hbm [thread:$0]  %s145_s1, 384, %s289_s2, [#allocation4], %s250_s12, %s250_s12, %s251_s13  }
  0x41   :  { %247 = dma.done.wait [#allocation4], 384  }
  0x42   :  { %248 = vsyncadd [#allocation4], 4294966912 }
  0x43   :  { %154 = vsyncpa [#allocation3], 1 }
  0x44   :  { %155 = vsyncpa [#allocation6], 1 }
  0x45   :  { %156 = vsyncpa [#allocation4], 1 }

</bundles_post_ra>
